<compile_context>
chip_gen: v7x
topology: tpu7x:2x2x1
jax: 0.10.0
libtpu: 0.0.40
codegen_flags: <defaults>
</compile_context>

<pallas_src>
import functools

import jax
import jax.numpy as jnp
from jax.experimental import pallas as pl
from jax.experimental.pallas import tpu as pltpu


_VMEM_LIMIT_BYTES = 48 * 1024 * 1024        # explicit scoped-VMEM budget (v7x: 64 MiB physical)
_FUSED_RESIDENT_BUDGET = 24 * 1024 * 1024   # max bytes of the VMEM-resident per-batch output


def _round_up(x, m):
    return ((x + m - 1) // m) * m


def _conv_tile(f_ref, w_ref, b_ref, c_pad, leaky):
    """Per-tile compute shared by both paths: symmetric 1-ring fns + Conv2d(1,5) matmul."""
    f = f_ref[0]                                   # [5*c_pad, tile_e] bf16
    f0 = f[0 * c_pad:1 * c_pad]
    f1 = f[1 * c_pad:2 * c_pad]
    f2 = f[2 * c_pad:3 * c_pad]
    f3 = f[3 * c_pad:4 * c_pad]
    f4 = f[4 * c_pad:5 * c_pad]
    # MeshConv symmetric (order-invariant) functions over the 1-ring (VPU filler).
    # TODO(synk): if a bundle dump shows this concatenate materializing an extra VMEM
    # copy, stage the five pieces into a VMEM scratch with sublane-aligned stores.
    g = jnp.concatenate(
        [f0, f1 + f3, f2 + f4, jnp.abs(f1 - f3), jnp.abs(f2 - f4)], axis=0)
    # Conv2d(1,5) as a single bf16 MXU matmul -> [Cout, tile_e]; no transpose needed.
    y = jnp.dot(w_ref[...], g, preferred_element_type=jnp.float32)
    y = y + b_ref[...]
    return jnp.where(y > 0, y, leaky * y)          # leaky_relu (leaky=0 -> relu)


# -----------------------------------------------------------------------------
# Fused kernel: conv + leaky_relu + in-place instance norm on a VMEM-resident
# per-batch output block (tiled over E, normalization at the last E tile).
# -----------------------------------------------------------------------------
def _fused_conv_norm_kernel(f_ref, w_ref, b_ref, o_ref, sum_ref, *,
                            c_pad, n_edges, e_pad, tile_e, leaky, eps):
    # f_ref   : [1, 5*c_pad, tile_e] bf16   raw gathered 1-ring features (neighbor-major)
    # w_ref   : [Cout, 5*c_pad]      bf16   resident across the grid
    # b_ref   : [Cout, 1]            f32
    # o_ref   : [1, Cout, e_pad]     f32    VMEM-resident across the E axis (per batch)
    # sum_ref : [Cout, 1]            f32    running per-channel sum across E tiles
    e = pl.program_id(1)
    n_tiles = e_pad // tile_e
    has_pad = e_pad > n_edges

    @pl.when(e == 0)
    def _init():
        sum_ref[...] = jnp.zeros_like(sum_ref)

    y = _conv_tile(f_ref, w_ref, b_ref, c_pad, leaky)          # [Cout, tile_e] f32
    start = pl.multiple_of(e * tile_e, 128)

    def _store(y_val):
        o_ref[0, :, pl.ds(start, tile_e)] = y_val
        sum_ref[...] += jnp.sum(y_val, axis=-1, keepdims=True)

    if has_pad:
        n_valid_last = n_edges - (n_tiles - 1) * tile_e

        @pl.when(e != n_tiles - 1)
        def _store_full():                                     # no padded columns here
            _store(y)

        @pl.when(e == n_tiles - 1)
        def _store_masked():                                   # zero padded edge columns
            col = jax.lax.broadcasted_iota(jnp.int32, y.shape, 1)
            _store(jnp.where(col < n_valid_last, y, 0.0))
    else:
        _store(y)

    @pl.when(e == n_tiles - 1)
    def _finalize():
        inv_n = 1.0 / float(n_edges)
        mean = sum_ref[...] * inv_n                            # [Cout, 1]

        # Exact two-pass (biased) variance over the resident block, slab by slab.
        def _sq_body(t, acc):
            s = pl.multiple_of(t * tile_e, 128)
            d = o_ref[0, :, pl.ds(s, tile_e)] - mean
            if has_pad:
                col = jax.lax.broadcasted_iota(jnp.int32, d.shape, 1) + t * tile_e
                d = jnp.where(col < n_edges, d, 0.0)
            return acc + jnp.sum(d * d, axis=-1, keepdims=True)

        sq = jax.lax.fori_loop(0, n_tiles, _sq_body, jnp.zeros_like(mean))
        inv_std = jax.lax.rsqrt(sq * inv_n + eps)

        def _norm_body(t, carry):
            s = pl.multiple_of(t * tile_e, 128)
            ys = o_ref[0, :, pl.ds(s, tile_e)]
            o_ref[0, :, pl.ds(s, tile_e)] = (ys - mean) * inv_std
            return carry

        jax.lax.fori_loop(0, n_tiles, _norm_body, 0)


# -----------------------------------------------------------------------------
# Fallback kernel 1 (two-pass path): conv + leaky_relu, bf16 intermediate, stats
# via a shifted single-pass accumulator (numerically stable).
# -----------------------------------------------------------------------------
def _conv_stats_kernel(f_ref, w_ref, b_ref, y_ref, stats_ref, sum_ref, sq_ref, m0_ref, *,
                       c_pad, n_edges, e_pad, tile_e, leaky, eps):
    e = pl.program_id(1)
    n_tiles = e_pad // tile_e
    has_pad = e_pad > n_edges

    y = _conv_tile(f_ref, w_ref, b_ref, c_pad, leaky)          # [Cout, tile_e] f32
    if has_pad:
        col = jax.lax.broadcasted_iota(jnp.int32, y.shape, 1)
        valid = col < (n_edges - e * tile_e)
        y = jnp.where(valid, y, 0.0)

    y_ref[0] = y.astype(y_ref.dtype)                           # bf16 intermediate

    @pl.when(e == 0)
    def _init():
        sum_ref[...] = jnp.zeros_like(sum_ref)
        sq_ref[...] = jnp.zeros_like(sq_ref)
        # Shift for stable single-pass variance: first-tile mean (any value works).
        m0_ref[...] = jnp.sum(y, axis=-1, keepdims=True) * (1.0 / float(tile_e))

    d = y - m0_ref[...]
    if has_pad:
        d = jnp.where(valid, d, 0.0)
    sum_ref[...] += jnp.sum(y, axis=-1, keepdims=True)
    sq_ref[...] += jnp.sum(d * d, axis=-1, keepdims=True)

    @pl.when(e == n_tiles - 1)
    def _finalize():
        inv_n = 1.0 / float(n_edges)
        mean = sum_ref[...] * inv_n
        m0 = m0_ref[...]
        var = sq_ref[...] * inv_n - (mean - m0) * (mean - m0)  # shifted -> no cancellation
        inv_std = jax.lax.rsqrt(jnp.maximum(var, 0.0) + eps)
        stats_ref[0] = jnp.concatenate([mean, inv_std], axis=-1)


def _normalize_kernel(y_ref, stats_ref, o_ref):
    # y_ref: [1, Cout, tile_e] bf16 ; stats_ref: [1, Cout, 2] f32 ; o_ref: [1, Cout, tile_e] f32
    st = stats_ref[0]
    mean = st[:, 0:1]
    inv_std = st[:, 1:2]
    o_ref[0] = (y_ref[0].astype(jnp.float32) - mean) * inv_std


def _mesh_conv_block_pallas(f_raw, w_flat, bias, *, n_edges, leaky, eps, tile_e,
                            two_pass=None):
    B, K, e_pad = f_raw.shape
    c_pad = K // 5
    cout = w_flat.shape[0]
    n_tiles = e_pad // tile_e

    if two_pass is None:
        # Resident per-batch output must fit comfortably in VMEM (sized against v7x 64 MiB).
        two_pass = cout * e_pad * 4 > _FUSED_RESIDENT_BUDGET

    if not two_pass:
        kernel = functools.partial(
            _fused_conv_norm_kernel, c_pad=c_pad, n_edges=int(n_edges), e_pad=int(e_pad),
            tile_e=int(tile_e), leaky=float(leaky), eps=float(eps))
        return pl.pallas_call(
            kernel,
            out_shape=jax.ShapeDtypeStruct((B, cout, e_pad), jnp.float32),
            grid_spec=pltpu.PrefetchScalarGridSpec(
                num_scalar_prefetch=0,
                grid=(B, n_tiles),                                  # E (reduction) axis last
                in_specs=[
                    pl.BlockSpec((1, K, tile_e), lambda b, e: (b, 0, e)),
                    pl.BlockSpec((cout, K), lambda b, e: (0, 0)),   # weight stays resident
                    pl.BlockSpec((cout, 1), lambda b, e: (0, 0)),   # bias stays resident
                ],
                # Same block index across the E axis -> VMEM-resident per-batch output.
                out_specs=pl.BlockSpec((1, cout, e_pad), lambda b, e: (b, 0, 0)),
                scratch_shapes=[pltpu.VMEM((cout, 1), jnp.float32)]),
            compiler_params=pltpu.CompilerParams(
                dimension_semantics=("parallel", "arbitrary"),
                vmem_limit_bytes=_VMEM_LIMIT_BYTES),
        )(f_raw, w_flat, bias)

    # ---- two-pass fallback: bf16 intermediate + separate normalize pass ----
    kernel = functools.partial(
        _conv_stats_kernel, c_pad=c_pad, n_edges=int(n_edges), e_pad=int(e_pad),
        tile_e=int(tile_e), leaky=float(leaky), eps=float(eps))

    y_raw, stats = pl.pallas_call(
        kernel,
        out_shape=(jax.ShapeDtypeStruct((B, cout, e_pad), jnp.bfloat16),
                   jax.ShapeDtypeStruct((B, cout, 2), jnp.float32)),
        grid_spec=pltpu.PrefetchScalarGridSpec(
            num_scalar_prefetch=0,
            grid=(B, n_tiles),
            in_specs=[
                pl.BlockSpec((1, K, tile_e), lambda b, e: (b, 0, e)),
                pl.BlockSpec((cout, K), lambda b, e: (0, 0)),
                pl.BlockSpec((cout, 1), lambda b, e: (0, 0)),
            ],
            out_specs=[
                pl.BlockSpec((1, cout, tile_e), lambda b, e: (b, 0, e)),
                pl.BlockSpec((1, cout, 2), lambda b, e: (b, 0, 0)),
            ],
            scratch_shapes=[pltpu.VMEM((cout, 1), jnp.float32),
                            pltpu.VMEM((cout, 1), jnp.float32),
                            pltpu.VMEM((cout, 1), jnp.float32)]),
        compiler_params=pltpu.CompilerParams(
            dimension_semantics=("parallel", "arbitrary"),
            vmem_limit_bytes=_VMEM_LIMIT_BYTES),
    )(f_raw, w_flat, bias)

    out = pl.pallas_call(
        _normalize_kernel,
        out_shape=jax.ShapeDtypeStruct((B, cout, e_pad), jnp.float32),
        grid_spec=pltpu.PrefetchScalarGridSpec(
            num_scalar_prefetch=0,
            grid=(B, n_tiles),
            in_specs=[
                pl.BlockSpec((1, cout, tile_e), lambda b, e: (b, 0, e)),
                pl.BlockSpec((1, cout, 2), lambda b, e: (b, 0, 0)),
            ],
            out_specs=pl.BlockSpec((1, cout, tile_e), lambda b, e: (b, 0, e))),
        compiler_params=pltpu.CompilerParams(
            dimension_semantics=("parallel", "parallel"),
            vmem_limit_bytes=_VMEM_LIMIT_BYTES),
    )(y_raw, stats)
    return out


# -----------------------------------------------------------------------------
# Glue: MeshConv 1-ring gather (plain JAX), producing a lane-dense, neighbor-major
# [B, 5*c_pad, e_pad] bf16 tensor (symmetric fns run in-kernel).
# -----------------------------------------------------------------------------
def _gather_mesh_features(fe, gemm_edges, c_pad, e_pad):
    """fe: [B, Cin, E, 1]; gemm_edges: [B, E, 4] int (-1 = missing neighbor)."""
    x = fe[..., 0].astype(jnp.bfloat16)                          # [B, C, E]
    B, C, E = x.shape
    x = jnp.pad(x, ((0, 0), (0, c_pad - C), (0, 0)))             # zero-pad channels
    xp = jnp.concatenate([jnp.zeros((B, c_pad, 1), x.dtype), x], axis=2)   # zero row at idx 0
    e_idx = jnp.arange(e_pad, dtype=jnp.int32)
    self_idx = jnp.where(e_idx < E, e_idx, -1)
    self_idx = jnp.broadcast_to(self_idx[None, :, None], (B, e_pad, 1))
    gemm_pad = jnp.pad(gemm_edges.astype(jnp.int32),
                       ((0, 0), (0, e_pad - E), (0, 0)), constant_values=-1)
    gi = jnp.concatenate([self_idx, gemm_pad], axis=2) + 1       # [B, e_pad, 5]
    gi = jnp.transpose(gi, (0, 2, 1))                            # [B, 5, e_pad]
    b_idx = jnp.arange(B)[:, None, None, None]
    c_idx = jnp.arange(c_pad)[None, None, :, None]
    f = xp[b_idx, c_idx, gi[:, :, None, :]]                      # [B, 5, c_pad, e_pad]
    return f.reshape(B, 5 * c_pad, e_pad)


class DownConvPallas:
    """DownConv(in_channels, out_channels, blocks=0, pool=0, leaky=0) forward.

    This MeshConv -> LeakyReLU -> InstanceNorm2d block is the building block that
    PriorNet's MeshEncoderDecoder (DownConv / UpConv layers) is composed of.
    """
    # TODO(synk): PriorNet's mesh bookkeeping (mesh.deep_copy(), MeshCNN pooling/unrolling,
    # build_v vertex scatter-average over python mesh objects) has no clean Pallas
    # equivalent; the full network is a plain-JAX composition of this block.

    def __init__(self, in_channels, out_channels, leaky=0.0, key=None, tile_e=None,
                 two_pass=None):
        self.in_channels = int(in_channels)
        self.out_channels = int(out_channels)
        self.leaky = float(leaky)
        self.eps = 1e-5
        self.tile_e = tile_e
        self.two_pass = two_pass
        if key is None:
            key = jax.random.PRNGKey(0)
        kw, kb = jax.random.split(key)
        fan_in = in_channels * 5
        bound = 1.0 / (fan_in ** 0.5)
        # Conv2d(in, out, kernel_size=(1, 5)) parameters, deterministic init.
        self.weight = jax.random.uniform(
            kw, (out_channels, in_channels, 1, 5), jnp.float32, -bound, bound)
        self.bias = jax.random.uniform(
            kb, (out_channels,), jnp.float32, -bound, bound)

    def _packed_weight(self, c_pad):
        w = self.weight[:, :, 0, :]                                      # [Cout, Cin, 5]
        w = jnp.pad(w, ((0, 0), (0, c_pad - self.in_channels), (0, 0)))  # pad contraction axis
        w = jnp.transpose(w, (0, 2, 1)).reshape(self.out_channels, 5 * c_pad)
        return w.astype(jnp.bfloat16)                                    # neighbor-major

    def __call__(self, x):
        fe, gemm_edges = x[0], x[1]     # fe: [B, Cin, E, 1], gemm_edges: [B, E, 4]
        B, C, E, _ = fe.shape
        c_pad = _round_up(max(C, 1), 16)
        tile_e = self.tile_e if self.tile_e is not None else min(1024, _round_up(E, 128))
        assert tile_e % 128 == 0, "tile_e must be a multiple of 128 (lane width)"
        e_pad = _round_up(E, tile_e)

        f_raw = _gather_mesh_features(fe, gemm_edges, c_pad, e_pad)      # [B, 5*c_pad, e_pad]
        w = self._packed_weight(c_pad)                                   # [Cout, 5*c_pad]
        b = self.bias.reshape(self.out_channels, 1).astype(jnp.float32)  # [Cout, 1]

        y = _mesh_conv_block_pallas(f_raw, w, b, n_edges=E, leaky=self.leaky,
                                    eps=self.eps, tile_e=tile_e,
                                    two_pass=self.two_pass)              # [B, Cout, e_pad]
        x1 = y[:, :, :E]
        before_pool = None
        return x1, before_pool


# -----------------------------------------------------------------------------
# Pure-JAX f32 reference (mirrors the PyTorch math) for a correctness check.
# -----------------------------------------------------------------------------
def _reference_forward(fe, gemm_edges, weight, bias, leaky, eps):
    x = fe[..., 0].astype(jnp.float32)                                   # [B, C, E]
    B, C, E = x.shape
    xp = jnp.concatenate([jnp.zeros((B, C, 1), x.dtype), x], axis=2)
    e_ids = jnp.broadcast_to(
        jnp.arange(E, dtype=gemm_edges.dtype)[None, :, None], (B, E, 1))
    gi = jnp.concatenate([e_ids, gemm_edges], axis=2) + 1                # [B, E, 5]
    b_idx = jnp.arange(B)[:, None, None, None]
    c_idx = jnp.arange(C)[None, :, None, None]
    f = xp[b_idx, c_idx, gi[:, None, :, :]]                              # [B, C, E, 5]
    f0, f1, f2, f3, f4 = (f[..., i] for i in range(5))
    G = jnp.stack([f0, f1 + f3, f2 + f4, jnp.abs(f1 - f3), jnp.abs(f2 - f4)], axis=3)
    y = jnp.einsum('bcej,ocj->boe', G, weight[:, :, 0, :]) + bias[None, :, None]
    y = jnp.where(y > 0, y, leaky * y)
    mean = y.mean(axis=-1, keepdims=True)
    var = ((y - mean) ** 2).mean(axis=-1, keepdims=True)                 # biased
    return (y - mean) * jax.lax.rsqrt(var + eps)


if __name__ == "__main__":
    B, Cin, Cout, E = 2, 4, 8, 300           # small shapes; E not a multiple of 128 on purpose
    key = jax.random.PRNGKey(0)
    k_fe, k_gemm, k_drop, k_params = jax.random.split(key, 4)

    fe = jax.random.normal(k_fe, (B, Cin, E, 1), jnp.float32)
    gemm = jax.random.randint(k_gemm, (B, E, 4), 0, E, dtype=jnp.int32)
    # encode a few missing 1-ring neighbours as -1 (MeshCNN convention -> zero row)
    drop = jax.random.uniform(k_drop, (B, E, 4)) < 0.05
    gemm = jnp.where(drop, -1, gemm)

    # tile_e=128 exercises the multi-tile E reduction + edge-padding mask path.
    # 1) fused path: instance norm applied in place on the VMEM-resident output block.
    model = DownConvPallas(Cin, Cout, leaky=0.0, key=k_params, tile_e=128)
    x1, before_pool = model((fe, gemm))
    x1 = jax.block_until_ready(x1)
    assert x1.shape == (B, Cout, E)
    assert before_pool is None

    ref = _reference_forward(fe, gemm, model.weight, model.bias, model.leaky, model.eps)
    err_fused = float(jnp.max(jnp.abs(x1 - ref)))
    assert err_fused < 0.1, f"fused path max abs err vs reference: {err_fused}"

    # 2) two-pass fallback (bf16 intermediate) used when the resident block won't fit VMEM.
    model2 = DownConvPallas(Cin, Cout, leaky=0.0, key=k_params, tile_e=128, two_pass=True)
    x2, _ = model2((fe, gemm))
    x2 = jax.block_until_ready(x2)
    err_two = float(jnp.max(jnp.abs(x2 - ref)))
    assert err_two < 0.1, f"two-pass path max abs err vs reference: {err_two}"

    print("KERNEL_OK")
</pallas_src>

<mosaic_0001>
module attributes {stable_mosaic.version = 11 : i64} {
  func.func @_fused_conv_norm_kernel(%arg0: i32, %arg1: i32, %arg2: memref<1x80x128xbf16, #tpu.memory_space<vmem>>, %arg3: memref<8x80xbf16, #tpu.memory_space<vmem>>, %arg4: memref<8x1xf32, #tpu.memory_space<vmem>>, %arg5: memref<1x8x384xf32, #tpu.memory_space<vmem>>, %arg6: memref<8x1xf32, #tpu.memory_space<vmem>>) attributes {dimension_semantics = [#tpu.dimension_semantics<parallel>, #tpu.dimension_semantics<arbitrary>], iteration_bounds = array<i64: 2, 3>, scalar_prefetch = 0 : i64, scratch_operands = 1 : i64, tpu.core_type = #tpu.core_type<tc>, window_params = [{transform_indices = @transform_0, window_bounds = array<i64: 1, 80, 128>}, {pipeline_mode = #tpu.pipeline_mode<synchronous>, transform_indices = @transform_1, window_bounds = array<i64: 8, 80>}, {pipeline_mode = #tpu.pipeline_mode<synchronous>, transform_indices = @transform_2, window_bounds = array<i64: 8, 1>}, {transform_indices = @transform_3, window_bounds = array<i64: 1, 8, 384>}]} {
    %c0_i32 = arith.constant 0 : i32
    %0 = arith.cmpi eq, %arg1, %c0_i32 : i32
    %1 = arith.extui %0 : i1 to i32
    %c0_i32_0 = arith.constant 0 : i32
    %2 = arith.cmpi ne, %1, %c0_i32_0 : i32
    scf.if %2 {
      %cst_14 = arith.constant 0.000000e+00 : f32
      %38 = vector.broadcast %cst_14 : f32 to vector<8x1xf32>
      %c0_15 = arith.constant 0 : index
      %c0_16 = arith.constant 0 : index
      %39 = vector.load %arg6[%c0_15, %c0_16] : memref<8x1xf32, #tpu.memory_space<vmem>>, vector<8x1xf32>
      tpu.vector_store %arg6[%c0_15, %c0_16], %38 {strides = array<i32>} : memref<8x1xf32, #tpu.memory_space<vmem>>, vector<8x1xf32>,
    } else {
    }
    %c0 = arith.constant 0 : index
    %c0_1 = arith.constant 0 : index
    %c0_2 = arith.constant 0 : index
    %3 = vector.load %arg2[%c0, %c0_1, %c0_2] : memref<1x80x128xbf16, #tpu.memory_space<vmem>>, vector<1x80x128xbf16>
    %4 = vector.shape_cast %3 : vector<1x80x128xbf16> to vector<80x128xbf16>
    %5 = vector.extract_strided_slice %4 {offsets = [0, 0], sizes = [16, 128], strides = [1, 1]} : vector<80x128xbf16> to vector<16x128xbf16>
    %6 = vector.extract_strided_slice %4 {offsets = [16, 0], sizes = [16, 128], strides = [1, 1]} : vector<80x128xbf16> to vector<16x128xbf16>
    %7 = vector.extract_strided_slice %4 {offsets = [32, 0], sizes = [16, 128], strides = [1, 1]} : vector<80x128xbf16> to vector<16x128xbf16>
    %8 = vector.extract_strided_slice %4 {offsets = [48, 0], sizes = [16, 128], strides = [1, 1]} : vector<80x128xbf16> to vector<16x128xbf16>
    %9 = vector.extract_strided_slice %4 {offsets = [64, 0], sizes = [16, 128], strides = [1, 1]} : vector<80x128xbf16> to vector<16x128xbf16>
    %10 = arith.addf %6, %8 : vector<16x128xbf16>
    %11 = arith.addf %7, %9 : vector<16x128xbf16>
    %12 = arith.subf %6, %8 : vector<16x128xbf16>
    %13 = math.absf %12 : vector<16x128xbf16>
    %14 = arith.subf %7, %9 : vector<16x128xbf16>
    %15 = math.absf %14 : vector<16x128xbf16>
    %16 = tpu.concatenate %5, %10, %11, %13, %15 in 0 : vector<16x128xbf16>, vector<16x128xbf16>, vector<16x128xbf16>, vector<16x128xbf16>, vector<16x128xbf16> -> vector<80x128xbf16>
    %c0_3 = arith.constant 0 : index
    %c0_4 = arith.constant 0 : index
    %17 = vector.load %arg3[%c0_3, %c0_4] : memref<8x80xbf16, #tpu.memory_space<vmem>>, vector<8x80xbf16>
    %cst = arith.constant dense<0.000000e+00> : vector<8x128xf32>
    %18 = tpu.matmul %17, %16, %cst {dimension_numbers = #tpu.dot_dimension_numbers<[1], [0], [0], [1], [0, 0, 1, 1], [], []>} : vector<8x80xbf16>, vector<80x128xbf16>, vector<8x128xf32> -> vector<8x128xf32>
    %c0_5 = arith.constant 0 : index
    %c0_6 = arith.constant 0 : index
    %19 = vector.load %arg4[%c0_5, %c0_6] : memref<8x1xf32, #tpu.memory_space<vmem>>, vector<8x1xf32>
    %20 = vector.broadcast %19 : vector<8x1xf32> to vector<8x128xf32>
    %21 = arith.addf %18, %20 : vector<8x128xf32>
    %cst_7 = arith.constant 0.000000e+00 : f32
    %22 = vector.broadcast %cst_7 : f32 to vector<8x128xf32>
    %23 = arith.cmpf ogt, %21, %22 : vector<8x128xf32>
    %cst_8 = arith.constant 0.000000e+00 : f32
    %24 = vector.broadcast %cst_8 : f32 to vector<8x128xf32>
    %25 = arith.mulf %24, %21 : vector<8x128xf32>
    %26 = arith.select %23, %21, %25 : vector<8x128xi1>, vector<8x128xf32>
    %c128_i32 = arith.constant 128 : i32
    %27 = arith.muli %arg1, %c128_i32 : i32
    %28 = tpu.assume_multiple %27, 128 : i32
    %c2_i32 = arith.constant 2 : i32
    %29 = arith.cmpi ne, %arg1, %c2_i32 : i32
    %30 = arith.extui %29 : i1 to i32
    %c0_i32_9 = arith.constant 0 : i32
    %31 = arith.cmpi ne, %30, %c0_i32_9 : i32
    scf.if %31 {
      %c0_14 = arith.constant 0 : index
      %c0_15 = arith.constant 0 : index
      %38 = arith.index_cast %28 : i32 to index
      %39 = vector.load %arg5[%c0_14, %c0_15, %38] : memref<1x8x384xf32, #tpu.memory_space<vmem>>, vector<1x8x128xf32>
      %40 = vector.shape_cast %39 : vector<1x8x128xf32> to vector<8x128xf32>
      %41 = vector.shape_cast %26 : vector<8x128xf32> to vector<1x8x128xf32>
      tpu.vector_store %arg5[%c0_14, %c0_15, %38], %41 {strides = array<i32>} : memref<1x8x384xf32, #tpu.memory_space<vmem>>, vector<1x8x128xf32>,
      %c0_16 = arith.constant 0 : index
      %c0_17 = arith.constant 0 : index
      %42 = vector.load %arg6[%c0_16, %c0_17] : memref<8x1xf32, #tpu.memory_space<vmem>>, vector<8x1xf32>
      %cst_18 = arith.constant dense<0.000000e+00> : vector<8xf32>
      %43 = vector.multi_reduction <add>, %26, %cst_18 [1] : vector<8x128xf32> to vector<8xf32>
      %44 = vector.shape_cast %43 : vector<8xf32> to vector<8x1xf32>
      %45 = arith.addf %42, %44 : vector<8x1xf32>
      %c0_19 = arith.constant 0 : index
      %c0_20 = arith.constant 0 : index
      %46 = vector.load %arg6[%c0_19, %c0_20] : memref<8x1xf32, #tpu.memory_space<vmem>>, vector<8x1xf32>
      tpu.vector_store %arg6[%c0_19, %c0_20], %45 {strides = array<i32>} : memref<8x1xf32, #tpu.memory_space<vmem>>, vector<8x1xf32>,
    } else {
    }
    %c2_i32_10 = arith.constant 2 : i32
    %32 = arith.cmpi eq, %arg1, %c2_i32_10 : i32
    %33 = arith.extui %32 : i1 to i32
    %c0_i32_11 = arith.constant 0 : i32
    %34 = arith.cmpi ne, %33, %c0_i32_11 : i32
    scf.if %34 {
      %38 = tpu.iota {dimensions = array<i32: 1>} : vector<8x128xi32>
      %c44_i32 = arith.constant 44 : i32
      %39 = vector.broadcast %c44_i32 : i32 to vector<8x128xi32>
      %40 = arith.cmpi slt, %38, %39 : vector<8x128xi32>
      %cst_14 = arith.constant 0.000000e+00 : f32
      %41 = vector.broadcast %cst_14 : f32 to vector<8x128xf32>
      %42 = arith.select %40, %26, %41 : vector<8x128xi1>, vector<8x128xf32>
      %c0_15 = arith.constant 0 : index
      %c0_16 = arith.constant 0 : index
      %43 = arith.index_cast %28 : i32 to index
      %44 = vector.load %arg5[%c0_15, %c0_16, %43] : memref<1x8x384xf32, #tpu.memory_space<vmem>>, vector<1x8x128xf32>
      %45 = vector.shape_cast %44 : vector<1x8x128xf32> to vector<8x128xf32>
      %46 = vector.shape_cast %42 : vector<8x128xf32> to vector<1x8x128xf32>
      tpu.vector_store %arg5[%c0_15, %c0_16, %43], %46 {strides = array<i32>} : memref<1x8x384xf32, #tpu.memory_space<vmem>>, vector<1x8x128xf32>,
      %c0_17 = arith.constant 0 : index
      %c0_18 = arith.constant 0 : index
      %47 = vector.load %arg6[%c0_17, %c0_18] : memref<8x1xf32, #tpu.memory_space<vmem>>, vector<8x1xf32>
      %cst_19 = arith.constant dense<0.000000e+00> : vector<8xf32>
      %48 = vector.multi_reduction <add>, %42, %cst_19 [1] : vector<8x128xf32> to vector<8xf32>
      %49 = vector.shape_cast %48 : vector<8xf32> to vector<8x1xf32>
      %50 = arith.addf %47, %49 : vector<8x1xf32>
      %c0_20 = arith.constant 0 : index
      %c0_21 = arith.constant 0 : index
      %51 = vector.load %arg6[%c0_20, %c0_21] : memref<8x1xf32, #tpu.memory_space<vmem>>, vector<8x1xf32>
      tpu.vector_store %arg6[%c0_20, %c0_21], %50 {strides = array<i32>} : memref<8x1xf32, #tpu.memory_space<vmem>>, vector<8x1xf32>,
    } else {
    }
    %c2_i32_12 = arith.constant 2 : i32
    %35 = arith.cmpi eq, %arg1, %c2_i32_12 : i32
    %36 = arith.extui %35 : i1 to i32
    %c0_i32_13 = arith.constant 0 : i32
    %37 = arith.cmpi ne, %36, %c0_i32_13 : i32
    scf.if %37 {
      %c0_14 = arith.constant 0 : index
      %c0_15 = arith.constant 0 : index
      %38 = vector.load %arg6[%c0_14, %c0_15] : memref<8x1xf32, #tpu.memory_space<vmem>>, vector<8x1xf32>
      %cst_16 = arith.constant 0.00333333341 : f32
      %39 = vector.broadcast %cst_16 : f32 to vector<8x1xf32>
      %40 = arith.mulf %38, %39 : vector<8x1xf32>
      %cst_17 = arith.constant 0.000000e+00 : f32
      %41 = vector.broadcast %cst_17 : f32 to vector<8x1xf32>
      %c0_i32_18 = arith.constant 0 : i32
      %c3_i32 = arith.constant 3 : i32
      %42 = arith.addi %c0_i32_18, %c3_i32 : i32
      %c1_i32 = arith.constant 1 : i32
      %43 = scf.for %arg7 = %c0_i32_18 to %42 step %c1_i32 iter_args(%arg8 = %41) -> (vector<8x1xf32>)  : i32 {
        %c128_i32_26 = arith.constant 128 : i32
        %50 = arith.muli %arg7, %c128_i32_26 : i32
        %51 = tpu.assume_multiple %50, 128 : i32
        %c0_27 = arith.constant 0 : index
        %c0_28 = arith.constant 0 : index
        %52 = arith.index_cast %51 : i32 to index
        %53 = vector.load %arg5[%c0_27, %c0_28, %52] : memref<1x8x384xf32, #tpu.memory_space<vmem>>, vector<1x8x128xf32>
        %54 = vector.shape_cast %53 : vector<1x8x128xf32> to vector<8x128xf32>
        %55 = vector.broadcast %40 : vector<8x1xf32> to vector<8x128xf32>
        %56 = arith.subf %54, %55 : vector<8x128xf32>
        %57 = tpu.iota {dimensions = array<i32: 1>} : vector<8x128xi32>
        %c128_i32_29 = arith.constant 128 : i32
        %58 = arith.muli %arg7, %c128_i32_29 : i32
        %59 = vector.broadcast %58 : i32 to vector<8x128xi32>
        %60 = arith.addi %57, %59 : vector<8x128xi32>
        %c300_i32 = arith.constant 300 : i32
        %61 = vector.broadcast %c300_i32 : i32 to vector<8x128xi32>
        %62 = arith.cmpi slt, %60, %61 : vector<8x128xi32>
        %cst_30 = arith.constant 0.000000e+00 : f32
        %63 = vector.broadcast %cst_30 : f32 to vector<8x128xf32>
        %64 = arith.select %62, %56, %63 : vector<8x128xi1>, vector<8x128xf32>
        %65 = arith.mulf %64, %64 : vector<8x128xf32>
        %cst_31 = arith.constant dense<0.000000e+00> : vector<8xf32>
        %66 = vector.multi_reduction <add>, %65, %cst_31 [1] : vector<8x128xf32> to vector<8xf32>
        %67 = vector.shape_cast %66 : vector<8xf32> to vector<8x1xf32>
        %68 = arith.addf %arg8, %67 : vector<8x1xf32>
        scf.yield %68 : vector<8x1xf32>
      }
      %c3_i32_19 = arith.constant 3 : i32
      %cst_20 = arith.constant 0.00333333341 : f32
      %44 = vector.broadcast %cst_20 : f32 to vector<8x1xf32>
      %45 = arith.mulf %43, %44 : vector<8x1xf32>
      %cst_21 = arith.constant 9.99999974E-6 : f32
      %46 = vector.broadcast %cst_21 : f32 to vector<8x1xf32>
      %47 = arith.addf %45, %46 : vector<8x1xf32>
      %48 = math.rsqrt %47 : vector<8x1xf32>
      %c0_i32_22 = arith.constant 0 : i32
      %c3_i32_23 = arith.constant 3 : i32
      %49 = arith.addi %c0_i32_22, %c3_i32_23 : i32
      %c1_i32_24 = arith.constant 1 : i32
      scf.for %arg7 = %c0_i32_22 to %49 step %c1_i32_24  : i32 {
        %c128_i32_26 = arith.constant 128 : i32
        %50 = arith.muli %arg7, %c128_i32_26 : i32
        %51 = tpu.assume_multiple %50, 128 : i32
        %c0_27 = arith.constant 0 : index
        %c0_28 = arith.constant 0 : index
        %52 = arith.index_cast %51 : i32 to index
        %53 = vector.load %arg5[%c0_27, %c0_28, %52] : memref<1x8x384xf32, #tpu.memory_space<vmem>>, vector<1x8x128xf32>
        %54 = vector.shape_cast %53 : vector<1x8x128xf32> to vector<8x128xf32>
        %55 = vector.broadcast %40 : vector<8x1xf32> to vector<8x128xf32>
        %56 = arith.subf %54, %55 : vector<8x128xf32>
        %57 = vector.broadcast %48 : vector<8x1xf32> to vector<8x128xf32>
        %58 = arith.mulf %56, %57 : vector<8x128xf32>
        %c0_29 = arith.constant 0 : index
        %c0_30 = arith.constant 0 : index
        %59 = arith.index_cast %51 : i32 to index
        %60 = vector.load %arg5[%c0_29, %c0_30, %59] : memref<1x8x384xf32, #tpu.memory_space<vmem>>, vector<1x8x128xf32>
        %61 = vector.shape_cast %60 : vector<1x8x128xf32> to vector<8x128xf32>
        %62 = vector.shape_cast %58 : vector<8x128xf32> to vector<1x8x128xf32>
        tpu.vector_store %arg5[%c0_29, %c0_30, %59], %62 {strides = array<i32>} : memref<1x8x384xf32, #tpu.memory_space<vmem>>, vector<1x8x128xf32>,
      }
      %c3_i32_25 = arith.constant 3 : i32
    } else {
    }
    return
  }
  func.func @transform_0(%arg0: i32, %arg1: i32) -> (i32, i32, i32) {
    %c0_i32 = arith.constant 0 : i32
    %c0_i32_0 = arith.constant 0 : i32
    return %arg0, %c0_i32, %arg1 : i32, i32, i32
  }
  func.func @transform_1(%arg0: i32, %arg1: i32) -> (i32, i32) {
    %c0_i32 = arith.constant 0 : i32
    %c0_i32_0 = arith.constant 0 : i32
    %c0_i32_1 = arith.constant 0 : i32
    return %c0_i32, %c0_i32_0 : i32, i32
  }
  func.func @transform_2(%arg0: i32, %arg1: i32) -> (i32, i32) {
    %c0_i32 = arith.constant 0 : i32
    %c0_i32_0 = arith.constant 0 : i32
    %c0_i32_1 = arith.constant 0 : i32
    return %c0_i32, %c0_i32_0 : i32, i32
  }
  func.func @transform_3(%arg0: i32, %arg1: i32) -> (i32, i32, i32) {
    %c0_i32 = arith.constant 0 : i32
    %c0_i32_0 = arith.constant 0 : i32
    %c0_i32_1 = arith.constant 0 : i32
    return %arg0, %c0_i32, %c0_i32_0 : i32, i32, i32
  }
}

</mosaic_0001>

<bundles_post_ra>
// kernel: tpu_custom_call.1
= control target key start
LH: loop header
LB: loop body
LE: loop exit
PB: predicated region body
PF: predicated region fallthrough
CT: control target
= control target key end

     0   :  { %8 = vsyncpa [#allocation4], 0  ;;  %s1155_s0 = inlined_call_operand.hbm [shape: bf16[2,80,384], index: 0, kind: input, shape index: {}]   ;;  %s1156_s1 = inlined_call_operand.vmem [shape: bf16[8,80], index: 1, kind: input, shape index: {}]   ;;  %s1157_s2 = inlined_call_operand.vmem [shape: f32[8,1], index: 2, kind: input, shape index: {}]   ;;  %s1158_s3 = inlined_call_operand.hbm [shape: f32[2,8,384], index: 3, kind: output, shape index: {}]  }
   0x1   :  { %10 = vsyncpa [#allocation4 + $0x1], 0 }
   0x2   :  { %11 = vsyncpa [#allocation5], 0 }
   0x3   :  { %13 = vsyncpa [#allocation5 + $0x1], 0  ;;  %s923_s12 = smov 0   ;;  %s925_s13 = smov 0  }
   0x4   :  { %s927_s14 = smov 0   ;;  %s929_s15 = smov 0  }
   0x5   :  { %s931_s16 = smov 0   ;;  %s933_s17 = smov 0  }
   0x6   :  { %s935_s18 = smov 0   ;;  %s937_s19 = smov 0  }
   0x7   :  { %s939_s20 = smov 0   ;;  %s941_s21 = smov 0  }
   0x8   :  { %s943_s22 = smov 0  }
   0x9 LB: > { %1163 = sst [smem:[#allocation9_spill]] %s874_s21  ;;  %s523_s23 = sadd.s32 4294967295, %s878_s22   ;;  %s878_s22 = sphi %s943_s22, %s19_s22   ;;  %s874_s21 = sphi %s941_s21, %s1175_s21   ;;  %s870_s20 = sphi %s939_s20, %s1183_s20   ;;  %s866_s19 = sphi %s937_s19, %s1173_s19   ;;  %s862_s18 = sphi %s935_s18, %s1182_s18   ;;  %s858_s17 = sphi %s933_s17, %s1181_s17   ;;  %s854_s16 = sphi %s931_s16, %s1180_s16   ;;  %s850_s15 = sphi %s929_s15, %s1179_s15   ;;  %s846_s14 = sphi %s927_s14, %s1178_s14   ;;  %s842_s13 = sphi %s925_s13, %s1177_s13   ;;  %s838_s12 = sphi %s923_s12, %s1176_s12  }
   0xa   : > { %s524_s24 = sadd.s32 4294967294, %s878_s22   ;;  %s28_s25 = sadd.s32 1, %s870_s20 }
   0xb   : > { %s31_s26 = sadd.s32 1, %s874_s21  ;;  %p29_p0 = scmp.ge.s32.totalorder %s28_s25, 3 }
   0xc   : > { %s40_s27 = sadd.s32 1, %s858_s17  ;;  %p47_p1 = scmp.ne.s32.totalorder %s858_s17, %s854_s16 }
   0xd   : > { %p48_p2 = scmp.eq.s32.totalorder %s878_s22, 0  ;;  %s1185_s25 = smov (%p29_p0, %s28_s25), 0 }
   0xe   : > { %1164 = sst [smem:[#allocation10_spill]] %s1185_s25  ;;  %s1187_s26 = smov (!%p29_p0, %s31_s26), %s874_s21 }
   0xf   : > { %s36_s28 = ssub.s32 %s870_s20, %s1185_s25  ;;  %p989_p3 = por %p48_p2, %p47_p1 }
  0x10   : > { %p33_p4 = scmp.ge.s32.totalorder %s1187_s26, 2  ;;  %p53_p5 = scmp.ne.s32.totalorder %s854_s16, %s850_s15 }
  0x11   : > { %p54_p6 = scmp.eq.s32.totalorder %s523_s23, 0  ;;  %s108_s30 = sadd.s32 1, %s846_s14 }
  0x12   : > { %s1189_s26 = smov (%p33_p4, %s1187_s26), 0  ;;  %p118_p8 = scmp.ne.s32.totalorder %s846_s14, %s842_s13 }
  0x13   : > { %1166 = sst [smem:[#allocation11_spill]] %s1189_s26  ;;  %p997_p7 = por %p54_p6, %p53_p5 }
  0x14   : > { %s35_s5 = ssub.s32 %s874_s21, %s1189_s26  ;;  %p119_p9 = scmp.eq.s32.totalorder %s523_s23, 5 }
  0x15   : > { %s37_s6 = sor.u32 %s36_s28, %s35_s5  ;;  %p106_p10 = scmp.eq.s32.totalorder %s35_s5, 0 }
  0x16   : > { %p38_p11 = scmp.eq.s32.totalorder %s37_s6, 0  ;;  %p1005_p12 = por %p119_p9, %p118_p8 }
  0x17   : > { %s1010_s8 = scalar_select %p106_p10, %s846_s14, %s108_s30  }
  0x18   : > { %s1168_s7 = scalar_select %p1005_p12, 1, 0 }
  0x19   : > { %s1013_s9 = scalar_select %p38_p11, %s858_s17, %s40_s27  }
  0x1a   : > { %p124_p13 = scmp.ne.s32.totalorder %s842_s13, %s838_s12  ;;  %p125_p0 = scmp.eq.s32.totalorder %s524_s24, 5 }
  0x1b   : > { %p585_p1 = scmp.lt.s32.totalorder %s878_s22, 6  ;;  %s151_s11 = sand.u32 1, %s858_s17  }
  0x1c   : > { %p1018_p2 = por %p125_p0, %p124_p13  ;;  %s568_s15 = smul.u32 40, %s151_s11 }
  0x1d   : > { %s569_s23 = smul.u32 30, %s874_s21  ;;  %p1026_p4 = pnand %p585_p1, %p989_p3 }
  0x1e   : > { %s1169_s10 = scalar_select %p1018_p2, 1, 0 }
  0x1f   : > { %s160_s30 = sadd.s32 %s870_s20, %s569_s23  ;;  %s155_s27 = scalar_lea.vmem [#allocation3], %s568_s15 }
  0x20   : > { %s163_s5 = sshll.u32 %s155_s27, 4  ;;  %s527_s6 = sshll.u32 %s160_s30, 6  ;;  %s1031_s5 = int_to_ptr.vmem [resolvable:$true] %s163_s5 }
  0x21   : > { %s1036_s25 = scalar_lea.hbm %s1155_s0, %s527_s6  ;;  %s1038_s29 = scalar_lea.sflag [#allocation4], %s151_s11 }
  0x22   : > { %s714_s21 = scalar_lea.hbm %s1036_s25, 640  ;;  %p716_p5 = pneg %p1026_p4 }
  0x23   : > { %p715_p3 = scmp.ne.s32.totalorder %s1036_s25, %s714_s21  ;;  %s719_s26 = scalar_lea.hbm %s1155_s0, 3840 }
  0x24   : > { %p720_p9 = scmp.lt.u32.totalorder %s1036_s25, %s1155_s0  ;;  %p721_p10 = scmp.lt.u32.totalorder %s719_s26, %s714_s21 }
  0x25   : > { %p717_p6 = pnand %p716_p5, %p715_p3  ;;  %p723_p13 = scmp.lt.u32.totalorder %s714_s21, %s1036_s25 }
  0x26   : > { %p722_p11 = por %p721_p10, %p720_p9 }
  0x27   : > { %p718_p8 = pneg %p717_p6 }
  0x28   : > { %p724_p0 = por %p723_p13, %p722_p11 }
  0x2a   : > { %p725_p1 = pnand %p724_p0, %p718_p8 }
  0x2c   : > { %728 = shalt.err (!%p725_p1)
}
  0x2d   : > { %s729_s11 = scalar_lea.vmem %s1031_s5, 640  ;;  %s892_s6 = smov [#allocation3]  }
  0x2e   : > { %p730_p3 = scmp.ne.s32.totalorder %s1031_s5, %s729_s11  ;;  %s734_s24 = sshll.u32 %s892_s6, 4  ;;  %s735_s24 = int_to_ptr.vmem [resolvable:$false] %s734_s24 }
  0x2f   : > { %s736_s15 = scalar_lea.vmem %s735_s24, 1280  ;;  %p737_p12 = scmp.lt.s32.totalorder %s1031_s5, %s735_s24 }
  0x30   : > { %p732_p6 = pnand %p730_p3, %p716_p5  ;;  %p738_p9 = scmp.lt.s32.totalorder %s736_s15, %s729_s11 }
  0x32   : > { %p733_p2 = pneg %p732_p6  ;;  %p739_p10 = por %p738_p9, %p737_p12 }
  0x34   : > { %p740_p11 = pnand %p739_p10, %p733_p2 }
  0x36   : > { %743 = shalt.err (!%p740_p11)
}
  0x37   : > { %s893_s21 = smov 192   ;;  %s894_s23 = smov 64  }
  0x38   : > { %s895_s26 = smov 4   ;;  %p528_p5 = scmp.ge.s32.totalorder %s878_s22, 1 }
  0x39   : > { %580 = dma.hbm_to_vmem [thread:$0]  (!%p1026_p4), %s1036_s25, 640, %s1031_s5, %s1038_s29, %s893_s21, %s894_s23, %s895_s26  }
  0x3a   : > { %p171_p8 = scmp.lt.s32.totalorder %s878_s22, 7 }
  0x3c   : > { %p172_p13 = pnand %p528_p5, %p171_p8 }
  0x3d   : > { %s177_s30 = sand.u32 (!%p172_p13), 1, %s854_s16  }
  0x3e   : > { %175 = sbr.rel (%p172_p13) target bundleno = 1076 (0x434), region = 32  ;;  %s178_s11 = scalar_lea.sflag (!%p172_p13), [#allocation4], %s177_s30 }
  0x3f   : > { %s570_s27 = smul.u32 (!%p172_p13), 40, %s177_s30 }
  0x41   : > { %s181_s6 = scalar_lea.vmem (!%p172_p13), [#allocation3], %s570_s27 }
  0x45   : > { %829 = dma.done.wait (%p997_p7), %s178_s11, 640  }
  0x46   : > { %831 = vsyncadd (%p997_p7), %s178_s11, 4294966656  ;;  %s201_s24 = sand.u32 1, %s842_s13   ;;  %p529_p12 = scmp.ne.s32.totalorder %s862_s18, 0 }
  0x47   : > { %s571_s25 = smul.u32 24, %s201_s24  ;;  %vm209_vm0 = vcmask (!%p529_p12), 7168   ;;  %v896_v0 = vmov (!%p529_p12), 0.0  }
  0x48   : > { %208 = sbr.rel (%p529_p12) target bundleno = 79 (0x4f), region = 40  ;;  %210 = vst.msk [vmem:[#allocation2] sm:$0xff] (!%p529_p12), %vm209_vm0, %v896_v0 }
  0x49   : > { %s1076_s28 = scalar_lea.vmem [#allocation6], %s571_s25 }
  0x4f PF: > { %v709_v1 = vld [vmem:[%s181_s6] sm:$0xff]   ;;  %v897_v2 = vmov 0.0   ;;  %v213_v3 = vld [vmem:[%s181_s6 + $0x8] sm:$0xf]  ;;  %v214_v4 = vld [vmem:[%s181_s6 + $0xc] sm:$0xf] }
  0x50   : > { %554 = vmatprep.subr.bf16.mxu0 %v897_v2  ;;  %v217_v5 = vld [vmem:[%s181_s6 + $0x18] sm:$0xf]  ;;  %v218_v6 = vld [vmem:[%s181_s6 + $0x1c] sm:$0xf]  ;;  %v215_v8 = vld [vmem:[%s181_s6 + $0x10] sm:$0xf] }
  0x51   : > { %555 = vmatpush3.bf16.msra.mxu0 %v709_v1  ;;  %v221_v7 = vadd.bf16 %v217_v5, %v213_v3  ;;  %v216_v9 = vld [vmem:[%s181_s6 + $0x14] sm:$0xf]  ;;  %v225_v10 = vsub.bf16 %v213_v3, %v217_v5  ;;  %v222_v11 = vadd.bf16 %v218_v6, %v214_v4  ;;  %v219_v12 = vld [vmem:[%s181_s6 + $0x20] sm:$0xf]  ;;  %v220_v13 = vld [vmem:[%s181_s6 + $0x24] sm:$0xf]  ;;  %v226_v14 = vsub.bf16 %v214_v4, %v218_v6 }
  0x52   : > { %556 = vmatprep.subr.bf16.mxu0 %v897_v2  ;;  %v223_v15 = vadd.bf16 %v219_v12, %v215_v8  ;;  %v224_v16 = vadd.bf16 %v220_v13, %v216_v9  ;;  %vm898_vm1 = vmmov 0   ;;  %v264_v17 = vld [vmem:[%s1157_s2] sm:$0xff]  ;;  %v899_v20 = vmov 0   ;;  %s536_s21 = sshll.u32 %s862_s18, 7  ;;  %p537_p7 = scmp.eq.s32.totalorder %s862_s18, 2 }
  0x53   : > { %564 = vmatprep.mubr.msk.bf16.mxu0 %vm898_vm1, %v897_v2  ;;  %v531_v18 = vcombine.low %v221_v7, %v222_v11  ;;  %v227_v19 = vand.u32 2147450879, %v225_v10  ;;  %708 = vset.pattern.permute.xlu0 %v899_v20  ;;  %v228_v22 = vand.u32 2147450879, %v226_v14  ;;  %v229_v23 = vsub.bf16 %v215_v8, %v219_v12  ;;  %v263_v29 = vld [vmem:[%s1156_s1] sm:$0xf] }
  0x54   : > { %v532_v21 = vcombine.low %v223_v15, %v224_v16  ;;  %v230_v24 = vsub.bf16 %v216_v9, %v220_v13  ;;  %267 = vperm.xlu0 %708, %v264_v17   ;;  %vm270_vm2 = vcmask 654336   ;;  %s322_s23 = sshra.s32 (!%p537_p7), %s536_s21, 7  ;;  %v327_v38 = vld [vmem:[#allocation2] sm:$0xff] (!%p537_p7)  ;;  %vm331_vm4 = vcmask (!%p537_p7), 7168  }
  0x55   : > { %557 = vmatpush3.bf16.msra.mxu0 %v531_v18  ;;  %v533_v25 = vcombine.low %v227_v19, %v228_v22  ;;  %v231_v26 = vand.u32 2147450879, %v229_v23  ;;  %s538_s26 = sshll.u32 (!%p537_p7), %s322_s23, 3 }
  0x56   : > { %558 = vmatprep.subr.bf16.mxu0 %v897_v2  ;;  %v232_v27 = vand.u32 2147450879, %v230_v24  ;;  %s325_s30 = scalar_lea.vmem (!%p537_p7), %s1076_s28, %s538_s26 [#allocation6] }
  0x58   : > { %v534_v28 = vcombine.low %v231_v26, %v232_v27 }
  0x59   : > { %559 = vmatpush3.bf16.msra.mxu0 %v532_v21 }
  0x5a   : > { %560 = vmatprep.subr.bf16.mxu0 %v897_v2 }
  0x5d   : > { %561 = vmatpush3.bf16.msra.mxu0 %v533_v25 }
  0x5e   : > { %562 = vmatprep.subr.bf16.mxu0 %v897_v2 }
  0x61   : > { %563 = vmatpush3.bf16.msra.mxu0 %v534_v28 }
  0x64   : > { %565 = vmatmul.mubr.msk.bf16.vlgmr.msra.gmra.mrb[0].mxu0 %vm270_vm2, %v263_v29 }
  0xd3   : > { %v268_v30 = vpop.permute.xlu0 %267 }
 0x136   : > { %321 = sbr.rel (%p537_p7) target bundleno = 462 (0x1ce), region = 44 }
 0x137   : > { %v308_v31 = vpop.f32.mrb[0].mxu0 }
 0x138   : > { %v309_v32 = vadd.f32 %v308_v31, %v268_v30  ;;  %v566_v33 = vpop.f32.mrb[1].mxu0 }
 0x139   : > { %v311_v34 = vpop.f32.mrb[2].mxu0 }
 0x13a   : > { %vm314_vm3 = vcmp.gt.f32.partialorder %v309_v32, 0.0  ;;  %v315_v35 = vmul.f32 0.0, %v309_v32  ;;  %v567_v36 = vpop.f32.mrb[3].mxu0 }
 0x13c   : > { %v316_v37 = vsel %vm314_vm3, %v309_v32, %v315_v35 }
 0x13d   : > { %328 = vadd.xlane.f32.xlu0 %v316_v37  ;;  %326 = vst [vmem:[%s325_s30] sm:$0xff] %v316_v37 }
 0x1ca   : > { %v329_v39 = vpop.xlane.xlu0 %328 }
 0x1cb   : > { %v330_v40 = vadd.f32 %v329_v39, %v327_v38 }
 0x1cd   : > { %332 = vst.msk [vmem:[#allocation2] sm:$0xff] %vm331_vm4, %v330_v40 }
 0x1ce PF: > { %p539_p2 = scmp.ne.s32.totalorder %s862_s18, 2 }
 0x1cf   : > { %v337_v41 = vlaneseq (!%p539_p2)  ;;  %s341_s27 = sshra.s32 (!%p539_p2), %s536_s21, 7  ;;  %vm350_vm6 = vcmask (!%p539_p2), 7168   ;;  %v880_v49 = vmov (!%p539_p2), 0.0   ;;  %s884_s18 = smov (!%p539_p2), 0  }
 0x1d0   : > { %336 = sbr.rel (%p539_p2) target bundleno = 1051 (0x41b), region = 48  ;;  %s540_s11 = sshll.u32 (!%p539_p2), %s341_s27, 3 }
 0x1d1   : > { %v338_v42 = vand.u32 (!%p539_p2), 127, %v337_v41  ;;  %s344_s6 = scalar_lea.vmem (!%p539_p2), %s1076_s28, %s540_s11 [#allocation6] }
 0x1d3   : > { %vm339_vm5 = vcmp.lt.s32.totalorder (!%p539_p2), %v338_v42, 44 }
 0x1d4   : > { %v340_v43 = vsel (!%p539_p2), %vm339_vm5, %v316_v37, 0.0  ;;  %v346_v44 = vld [vmem:[#allocation2] sm:$0xff] (!%p539_p2) }
 0x1d5   : > { %345 = vst [vmem:[%s344_s6] sm:$0xff] (!%p539_p2), %v340_v43  ;;  %347 = vadd.xlane.f32.xlu0 (!%p539_p2), %v340_v43 }
 0x262   : > { %v348_v45 = vpop.xlane.xlu0 %347 }
 0x263   : > { %v349_v46 = vadd.f32 %v348_v45, %v346_v44 }
 0x265   : > { %351 = vst.msk [vmem:[#allocation2] sm:$0xff] %vm350_vm6, %v349_v46 }
 0x26c   : > { %v352_v47 = vld [vmem:[#allocation2] sm:$0xff] }
 0x26d   : > { %v353_v48 = vmul.f32 0.0033333334, %v352_v47 }
 0x26e LB: >> { %v900_v50 = vmov 0   ;;  %s541_s25 = sshll.u32 %s886_s18, 7  ;;  %s359_s18 = sadd.s32 1, %s886_s18   ;;  %s886_s18 = sphi %s884_s18, %s359_s18   ;;  %v882_v49 = vphi %v880_v49, %v881_v49  }
 0x26f   : >> { %710 = vset.pattern.permute.xlu0 %v900_v50  ;;  %s362_s4 = sshra.s32 %s541_s25, 7  ;;  %v373_v51 = vstv %s541_s25  ;;  %p356_p4 = scmp.ge.s32.totalorder %s359_s18, 3  }
 0x270   : >> { %369 = vperm.xlu0 %710, %v353_v48   ;;  %s542_s5 = sshll.u32 %s362_s4, 3  ;;  %v374_v52 = vadd.s32 %v373_v51, %v338_v42  ;;  %s888_s15 = smov (%p356_p4), 0  }
 0x271   : >> { %s365_s29 = scalar_lea.vmem %s1076_s28, %s542_s5 [#allocation6] }
 0x272   : >> { %v366_v53 = vld [vmem:[%s365_s29] sm:$0xff]  ;;  %vm375_vm7 = vcmp.lt.s32.totalorder %v374_v52, 300 }
 0x2ef   : >> { %v370_v54 = vpop.permute.xlu0 %369 }
 0x2f0   : >> { %v372_v55 = vsub.f32 %v366_v53, %v370_v54 }
 0x2f2   : >> { %v376_v56 = vsel %vm375_vm7, %v372_v55, 0.0 }
 0x2f3   : >> { %v377_v57 = vmul.f32 %v376_v56, %v376_v56 }
 0x2f5   : >> { %378 = vadd.xlane.f32.xlu0 %v377_v57 }
 0x37f   : > { %358 = sbr.rel (!%p356_p4) target bundleno = 622 (0x26e), region = 107 }
 0x382   : >> { %v379_v58 = vpop.xlane.xlu0 %378 }
 0x383   : >> { %v380_v59 = vadd.f32 %v882_v49, %v379_v58  }
 0x385   : >> { %v881_v49 = vmov %v380_v59   ;;  %v381_v60 = vmul.f32 (%p356_p4), 0.0033333334, %v380_v59 }
 0x387   : > { %v382_v61 = vadd.f32 1e-05, %v381_v60 }
 0x389   : > { %711 = vrsqrt.f32 %v382_v61 }
 0x393   : > { %v712_v62 = vpop.eup %711 }
 0x394 LB: >> { %v901_v63 = vmov 0   ;;  %s543_s21 = sshll.u32 %s890_s15, 7  ;;  %s389_s15 = sadd.s32 1, %s890_s15   ;;  %s890_s15 = sphi %s888_s15, %s389_s15  }
 0x395   : >> { %713 = vset.pattern.permute.xlu0 %v901_v63  ;;  %s391_s23 = sshra.s32 %s543_s21, 7  ;;  %p386_p0 = scmp.ge.s32.totalorder %s389_s15, 3  }
 0x396   : >> { %398 = vperm.xlu0 %713, %v353_v48   ;;  %s544_s26 = sshll.u32 %s391_s23, 3 }
 0x397   : >> { %s394_s30 = scalar_lea.vmem %s1076_s28, %s544_s26 [#allocation6] }
 0x398   : >> { %v395_v0 = vld [vmem:[%s394_s30] sm:$0xff] }
 0x414   : > { %388 = sbr.rel (!%p386_p0) target bundleno = 916 (0x394), region = 118 }
 0x415   : >> { %v399_v1 = vpop.permute.xlu0 %398 }
 0x416   : >> { %v401_v2 = vsub.f32 %v395_v0, %v399_v1 }
 0x418   : >> { %v402_v3 = vmul.f32 %v712_v62, %v401_v2 }
 0x41a   : >> { %403 = vst [vmem:[%s394_s30] sm:$0xff] %v402_v3 }
 0x41b PF: > { %s572_s27 = smul.u32 384, %s866_s19  ;;  %s419_s11 = sshll.u32 %s1076_s28, 4  ;;  %s420_s11 = int_to_ptr.vmem [resolvable:$true] %s419_s11 }
 0x41c   : > { %s405_s4 = scalar_lea.sflag [#allocation5], %s201_s24  ;;  %s744_s5 = scalar_lea.vmem %s420_s11, 384 }
 0x41d   : > { %s1097_s25 = scalar_lea.hbm %s1158_s3, %s572_s27  ;;  %p745_p1 = scmp.ne.s32.totalorder %s420_s11, %s744_s5 }
 0x41e   : > { %p1171_p3 = scmp.ne.s32.totalorder %s1168_s7, 0  ;;  %s902_s29 = smov [#allocation6]  }
 0x41f   : > { %s748_s15 = sshll.u32 %s902_s29, 4  ;;  %s749_s15 = int_to_ptr.vmem [resolvable:$false] %s748_s15 }
 0x420   : > { %p746_p6 = pnand %p745_p1, %p1171_p3  ;;  %s750_s21 = scalar_lea.vmem %s749_s15, 768 }
 0x421   : > { %p751_p10 = scmp.lt.s32.totalorder %s420_s11, %s749_s15  ;;  %p752_p11 = scmp.lt.s32.totalorder %s750_s21, %s744_s5 }
 0x422   : > { %p747_p9 = pneg %p746_p6 }
 0x423   : > { %p753_p5 = por %p752_p11, %p751_p10 }
 0x425   : > { %p754_p8 = pnand %p753_p5, %p747_p9 }
 0x427   : > { %757 = shalt.err (!%p754_p8)
}
 0x428   : > { %s758_s19 = scalar_lea.hbm %s1097_s25, 384  ;;  %s762_s23 = scalar_lea.hbm %s1158_s3, 768 }
 0x429   : > { %p759_p13 = scmp.ne.s32.totalorder %s1097_s25, %s758_s19  ;;  %p763_p2 = scmp.lt.u32.totalorder %s1097_s25, %s1158_s3 }
 0x42a   : > { %p764_p4 = scmp.lt.u32.totalorder %s762_s23, %s758_s19  ;;  %p766_p1 = scmp.lt.u32.totalorder %s758_s19, %s1097_s25 }
 0x42b   : > { %p760_p12 = pnand %p759_p13, %p1171_p3 }
 0x42c   : > { %p765_p0 = por %p764_p4, %p763_p2 }
 0x42d   : > { %p761_p7 = pneg %p760_p12 }
 0x42e   : > { %p767_p6 = por %p766_p1, %p765_p0 }
 0x430   : > { %p768_p9 = pnand %p767_p6, %p761_p7 }
 0x432   : > { %771 = shalt.err (!%p768_p9)
}
 0x433   : > { %575 = dma.vmem_to_hbm [thread:$0]  (%p1171_p3), %s420_s11, 384, %s1097_s25, %s405_s4  }
 0x434 PF: > { %p586_p10 = scmp.ge.s32.totalorder %s878_s22, 2  ;;  %s431_s27 = sand.u32 1, %s838_s12  }
 0x435   : > { %p1172_p11 = scmp.ne.s32.totalorder %s1169_s10, 0  ;;  %s432_s6 = scalar_lea.sflag [#allocation5], %s431_s27 }
 0x437   : > { %p582_p5 = pnand %p586_p10, %p1172_p11 }
 0x439   : > { %833 = dma.done.wait (!%p582_p5), %s432_s6, 384  }
 0x43a   : > { %835 = vsyncadd (!%p582_p5), %s432_s6, 4294966912  ;;  %s19_s22 = sadd.s32 1, %s878_s22   ;;  %s1173_s19 = sld [smem:[#allocation9_spill]] }
 0x43b   : > { %p16_p8 = scmp.ge.s32.totalorder %s19_s22, 8   ;;  %s1174_s7 = sld [smem:[#allocation10_spill]] }
 0x43c   : > { %s1175_s21 = sld [smem:[#allocation11_spill]]  ;;  %s1176_s12 = smov %s842_s13 }
 0x43d   : > { %s1177_s13 = smov %s846_s14  ;;  %s1178_s14 = smov %s1010_s8 }
 0x43e   : > { %s1179_s15 = smov %s854_s16  ;;  %s1180_s16 = smov %s858_s17 }
 0x43f   : > { %s1181_s17 = smov %s1013_s9  ;;  %s1182_s18 = smov %s870_s20 }
 0x440   :  { %18 = sbr.rel (!%p16_p8) target bundleno = 9 (0x9), region = 129 }
 0x441   : > { %s1183_s20 = smov %s1174_s7 }
 0x447   :  { %437 = vsyncpa [#allocation4], 1 }
 0x448   :  { %439 = vsyncpa [#allocation4 + $0x1], 1 }
 0x449   :  { %440 = vsyncpa [#allocation5], 1 }
 0x44a   :  { %442 = vsyncpa [#allocation5 + $0x1], 1 }

</bundles_post_ra>
